<compile_context>
chip_gen: v7x
topology: tpu7x:2x2x1
jax: 0.10.0
libtpu: 0.0.40
codegen_flags: <defaults>
</compile_context>

<pallas_src>
import jax
import jax.numpy as jnp
from jax.experimental import pallas as pl
from jax.experimental.pallas import tpu as pltpu


def _round_up(x: int, m: int) -> int:
    return (x + m - 1) // m * m


def _fold_norm_into_linear(mean_c, std_c, w, b, C, hw):
    """Fold per-channel (x - mean) / std into the linear head (f32)."""
    inv_std_d = jnp.broadcast_to((1.0 / std_c)[:, None], (C, hw)).reshape(-1)
    mean_d = jnp.broadcast_to(mean_c[:, None], (C, hw)).reshape(-1)
    w_folded = w * inv_std_d[:, None]                # (D, K)
    b_folded = b - (mean_d * inv_std_d) @ w          # (K,)
    return w_folded, b_folded


def folded_linear_kernel(x_ref, w_ref, b_ref, o_ref, acc_ref):
    """One (tm, K) output tile; reduction over D is the last grid axis."""
    k = pl.program_id(1)

    @pl.when(k == 0)
    def _():
        # Initialize the accumulator with the (broadcast) bias: removes the
        # separate epilogue add.
        acc_ref[...] = jnp.broadcast_to(b_ref[...], acc_ref.shape)

    acc_ref[...] += jnp.dot(
        x_ref[...], w_ref[...], preferred_element_type=jnp.float32
    )

    @pl.when(k == pl.num_programs(1) - 1)
    def _():
        o_ref[...] = acc_ref[...].astype(o_ref.dtype)


def make_normalization_wrapper_forward(
    mean_c, std_c, w, b, *, input_shape_chw, compute_dtype=jnp.bfloat16,
    max_tk=4096,
):
    """Build a jitted forward(x) that closes over the folded, cached weights.

    TODO(synk): the wrapped `self.model` is an arbitrary nn.Module; a linear
    classifier head stands in for it here.  Folding (x-mean)/std into the
    weights is only exactly equivalent for a linear wrapped model.
    """
    C, H, W = input_shape_chw
    D = C * H * W
    K = int(w.shape[1])
    assert w.shape == (D, K) and b.shape == (K,)

    # ---- Fold normalization into the head, in f32, ONCE. ----
    w_folded, b_folded = _fold_norm_into_linear(
        mean_c.astype(jnp.float32), std_c.astype(jnp.float32),
        w.astype(jnp.float32), b.astype(jnp.float32), C, H * W,
    )

    # ---- Cached, padded, quantized parameter arrays (computed once). ----
    D_pad = _round_up(D, 128)                  # usually a no-op (C*H*W % 128 == 0)
    tk = 128
    for cand in (4096, 2048, 1024, 512, 256, 128):
        if cand <= max_tk and D_pad % cand == 0:
            tk = cand
            break

    # Keep K unpadded: the weight stream stays (D_pad, K), not (D_pad, 128).
    w_p = jax.device_put(
        jnp.zeros((D_pad, K), compute_dtype).at[:D, :].set(
            w_folded.astype(compute_dtype))
    )
    b_p = jax.device_put(b_folded.astype(jnp.float32).reshape(1, K))

    def forward(x_nchw):
        N = x_nchw.shape[0]
        assert x_nchw.shape[1:] == (C, H, W)
        out_dtype = x_nchw.dtype

        # bf16 packs 16 rows per vreg -> round the batch tile to 16.
        if N >= 256:
            tm = 256
        elif N >= 128:
            tm = 128
        else:
            tm = _round_up(max(N, 1), 16)
        M_pad = _round_up(N, tm)

        # Fused pad + cast of the activations (no f32 intermediate pass).
        x2d = x_nchw.reshape(N, D).astype(compute_dtype)
        x_p = jnp.pad(x2d, ((0, M_pad - N), (0, D_pad - D)))

        grid = (M_pad // tm, D_pad // tk)

        itemsize = jnp.dtype(compute_dtype).itemsize
        cost = pl.CostEstimate(
            flops=2 * M_pad * D_pad * K,
            transcendentals=0,
            bytes_accessed=(
                M_pad * D_pad * itemsize        # x stream
                + D_pad * K * itemsize          # folded weight stream
                + K * 4                         # bias
                + M_pad * K * jnp.dtype(out_dtype).itemsize
            ),
        )

        out_p = pl.pallas_call(
            folded_linear_kernel,
            out_shape=jax.ShapeDtypeStruct((M_pad, K), out_dtype),
            grid_spec=pltpu.PrefetchScalarGridSpec(
                num_scalar_prefetch=0,
                grid=grid,
                in_specs=[
                    pl.BlockSpec((tm, tk), lambda i, k: (i, k)),  # x tile
                    pl.BlockSpec((tk, K), lambda i, k: (k, 0)),   # w tile (full K)
                    pl.BlockSpec((1, K), lambda i, k: (0, 0)),    # bias (full K)
                ],
                out_specs=pl.BlockSpec((tm, K), lambda i, k: (i, 0)),
                scratch_shapes=[pltpu.VMEM((tm, K), jnp.float32)],
            ),
            compiler_params=pltpu.CompilerParams(
                dimension_semantics=("parallel", "arbitrary"),
            ),
            cost_estimate=cost,
        )(x_p, w_p, b_p)

        return out_p[:N, :]

    return jax.jit(forward)


def reference_forward(x_nchw, mean_c, std_c, w, b):
    """Pure-JAX f32 reference matching the PyTorch module's forward."""
    xn = (x_nchw - mean_c[None, :, None, None]) / std_c[None, :, None, None]
    N = x_nchw.shape[0]
    return xn.reshape(N, -1) @ w + b[None, :]


if __name__ == "__main__":
    # Small shapes consistent with an image-classifier wrapper.
    N, C, H, W = 2, 4, 16, 16
    K = 10                      # num classes of the wrapped model's head
    D = C * H * W

    key = jax.random.PRNGKey(0)
    kx, kw, kb = jax.random.split(key, 3)

    x = jax.random.normal(kx, (N, C, H, W), dtype=jnp.float32)

    # Deterministic per-channel normalization constants (ImageNet-style).
    mean_c = jnp.array([0.485, 0.456, 0.406, 0.500], dtype=jnp.float32)
    std_c = jnp.array([0.229, 0.224, 0.225, 0.250], dtype=jnp.float32)

    # Deterministic parameters of the wrapped model (linear head).
    w = jax.random.normal(kw, (D, K), dtype=jnp.float32) * 0.02
    b = jax.random.normal(kb, (K,), dtype=jnp.float32) * 0.01

    # Weights are folded / padded / cast exactly once here.
    forward = make_normalization_wrapper_forward(
        mean_c, std_c, w, b, input_shape_chw=(C, H, W))

    out = jax.block_until_ready(forward(x))
    assert out.shape == (N, K)

    # 1) Check against the module's f32 reference (tolerance sized for the
    #    bf16 weight/activation quantization of the MXU path).
    ref = reference_forward(x, mean_c, std_c, w, b)
    assert jnp.allclose(out, ref, atol=1e-1, rtol=5e-2), (
        jnp.max(jnp.abs(out - ref))
    )

    # 2) Tight check against a bf16-quantized reference of the folded linear
    #    (same math the kernel performs, computed with plain jnp).
    w_folded, b_folded = _fold_norm_into_linear(mean_c, std_c, w, b, C, H * W)
    ref_q = (
        jnp.dot(
            x.reshape(N, D).astype(jnp.bfloat16),
            w_folded.astype(jnp.bfloat16),
            preferred_element_type=jnp.float32,
        )
        + b_folded[None, :]
    )
    assert jnp.allclose(out, ref_q, atol=1e-2, rtol=1e-2), (
        jnp.max(jnp.abs(out - ref_q))
    )

    print("KERNEL_OK")
</pallas_src>

<mosaic_0001>
module attributes {stable_mosaic.version = 11 : i64} {
  func.func @folded_linear_kernel(%arg0: i32, %arg1: i32, %arg2: memref<16x1024xbf16, #tpu.memory_space<vmem>>, %arg3: memref<1024x10xbf16, #tpu.memory_space<vmem>>, %arg4: memref<1x10xf32, #tpu.memory_space<vmem>>, %arg5: memref<16x10xf32, #tpu.memory_space<vmem>>, %arg6: memref<16x10xf32, #tpu.memory_space<vmem>>) attributes {dimension_semantics = [#tpu.dimension_semantics<parallel>, #tpu.dimension_semantics<arbitrary>], iteration_bounds = array<i64: 1, 1>, scalar_prefetch = 0 : i64, scratch_operands = 1 : i64, tpu.core_type = #tpu.core_type<tc>, window_params = [{transform_indices = @transform_0, window_bounds = array<i64: 16, 1024>}, {transform_indices = @transform_1, window_bounds = array<i64: 1024, 10>}, {pipeline_mode = #tpu.pipeline_mode<synchronous>, transform_indices = @transform_2, window_bounds = array<i64: 1, 10>}, {transform_indices = @transform_3, window_bounds = array<i64: 16, 10>}]} {
    %c0_i32 = arith.constant 0 : i32
    %0 = arith.cmpi eq, %arg1, %c0_i32 : i32
    %1 = arith.extui %0 : i1 to i32
    %c0_i32_0 = arith.constant 0 : i32
    %2 = arith.cmpi ne, %1, %c0_i32_0 : i32
    scf.if %2 {
      %c0_10 = arith.constant 0 : index
      %c0_11 = arith.constant 0 : index
      %12 = vector.load %arg4[%c0_10, %c0_11] : memref<1x10xf32, #tpu.memory_space<vmem>>, vector<1x10xf32>
      %13 = vector.shape_cast %12 : vector<1x10xf32> to vector<1x10xf32>
      %14 = vector.broadcast %13 : vector<1x10xf32> to vector<16x10xf32>
      %c0_12 = arith.constant 0 : index
      %c0_13 = arith.constant 0 : index
      %15 = vector.load %arg6[%c0_12, %c0_13] : memref<16x10xf32, #tpu.memory_space<vmem>>, vector<16x10xf32>
      tpu.vector_store %arg6[%c0_12, %c0_13], %14 {strides = array<i32>} : memref<16x10xf32, #tpu.memory_space<vmem>>, vector<16x10xf32>,
    } else {
    }
    %c0 = arith.constant 0 : index
    %c0_1 = arith.constant 0 : index
    %3 = vector.load %arg6[%c0, %c0_1] : memref<16x10xf32, #tpu.memory_space<vmem>>, vector<16x10xf32>
    %c0_2 = arith.constant 0 : index
    %c0_3 = arith.constant 0 : index
    %4 = vector.load %arg2[%c0_2, %c0_3] : memref<16x1024xbf16, #tpu.memory_space<vmem>>, vector<16x1024xbf16>
    %c0_4 = arith.constant 0 : index
    %c0_5 = arith.constant 0 : index
    %5 = vector.load %arg3[%c0_4, %c0_5] : memref<1024x10xbf16, #tpu.memory_space<vmem>>, vector<1024x10xbf16>
    %cst = arith.constant dense<0.000000e+00> : vector<16x10xf32>
    %6 = tpu.matmul %4, %5, %cst {dimension_numbers = #tpu.dot_dimension_numbers<[1], [0], [0], [1], [0, 0, 1, 1], [], []>} : vector<16x1024xbf16>, vector<1024x10xbf16>, vector<16x10xf32> -> vector<16x10xf32>
    %7 = arith.addf %3, %6 : vector<16x10xf32>
    %c0_6 = arith.constant 0 : index
    %c0_7 = arith.constant 0 : index
    %8 = vector.load %arg6[%c0_6, %c0_7] : memref<16x10xf32, #tpu.memory_space<vmem>>, vector<16x10xf32>
    tpu.vector_store %arg6[%c0_6, %c0_7], %7 {strides = array<i32>} : memref<16x10xf32, #tpu.memory_space<vmem>>, vector<16x10xf32>,
    %c0_i32_8 = arith.constant 0 : i32
    %9 = arith.cmpi eq, %arg1, %c0_i32_8 : i32
    %10 = arith.extui %9 : i1 to i32
    %c0_i32_9 = arith.constant 0 : i32
    %11 = arith.cmpi ne, %10, %c0_i32_9 : i32
    scf.if %11 {
      %c0_10 = arith.constant 0 : index
      %c0_11 = arith.constant 0 : index
      %12 = vector.load %arg6[%c0_10, %c0_11] : memref<16x10xf32, #tpu.memory_space<vmem>>, vector<16x10xf32>
      %c0_12 = arith.constant 0 : index
      %c0_13 = arith.constant 0 : index
      %13 = vector.load %arg5[%c0_12, %c0_13] : memref<16x10xf32, #tpu.memory_space<vmem>>, vector<16x10xf32>
      tpu.vector_store %arg5[%c0_12, %c0_13], %12 {strides = array<i32>} : memref<16x10xf32, #tpu.memory_space<vmem>>, vector<16x10xf32>,
    } else {
    }
    return
  }
  func.func @transform_0(%arg0: i32, %arg1: i32) -> (i32, i32) {
    %c0_i32 = arith.constant 0 : i32
    return %arg0, %arg1 : i32, i32
  }
  func.func @transform_1(%arg0: i32, %arg1: i32) -> (i32, i32) {
    %c0_i32 = arith.constant 0 : i32
    %c0_i32_0 = arith.constant 0 : i32
    return %arg1, %c0_i32 : i32, i32
  }
  func.func @transform_2(%arg0: i32, %arg1: i32) -> (i32, i32) {
    %c0_i32 = arith.constant 0 : i32
    %c0_i32_0 = arith.constant 0 : i32
    %c0_i32_1 = arith.constant 0 : i32
    return %c0_i32, %c0_i32_0 : i32, i32
  }
  func.func @transform_3(%arg0: i32, %arg1: i32) -> (i32, i32) {
    %c0_i32 = arith.constant 0 : i32
    %c0_i32_0 = arith.constant 0 : i32
    return %arg0, %c0_i32 : i32, i32
  }
}

</mosaic_0001>

<bundles_post_ra>
// kernel: forward.1
= control target key start
LH: loop header
LB: loop body
LE: loop exit
PB: predicated region body
PF: predicated region fallthrough
CT: control target
= control target key end

     0   :  { %8 = vsyncpa [#allocation4], 0  ;;  %s1038_s12 = smov [#allocation3]   ;;  %s1112_s0 = inlined_call_operand.vmem [shape: bf16[16,1024], index: 0, kind: input, shape index: {}]   ;;  %s1113_s1 = inlined_call_operand.hbm [shape: bf16[1024,10], index: 1, kind: input, shape index: {}]   ;;  %s1114_s2 = inlined_call_operand.vmem [shape: f32[1,10], index: 2, kind: input, shape index: {}]   ;;  %s1115_s3 = inlined_call_operand.vmem [shape: f32[16,10], index: 3, kind: output, shape index: {}]  }
   0x1   :  { %s16_s13 = sshll.u32 %s1038_s12, 4  ;;  %s1014_s16 = scalar_lea.hbm %s1113_s1, 8192  ;;  %s17_s13 = int_to_ptr.vmem [resolvable:$true] %s16_s13 }
   0x2   :  { %p1015_p0 = scmp.ne.s32.totalorder %s1113_s1, %s1014_s16  ;;  %p1018_p1 = scmp.lt.u32.totalorder %s1014_s16, %s1113_s1 }
   0x4   :  { %p1020_p2 = pnand %p1018_p1, %p1015_p0 }
   0x6   :  { %1023 = shalt.err (!%p1020_p2)
}
   0x7   :  { %s1024_s21 = scalar_lea.vmem %s17_s13, 8192  ;;  %p1029_p4 = scmp.lt.s32.totalorder %s17_s13, %s17_s13 }
   0x8   :  { %p1025_p3 = scmp.ne.s32.totalorder %s17_s13, %s1024_s21  ;;  %p1030_p5 = scmp.lt.s32.totalorder %s1024_s21, %s1024_s21 }
   0xa   :  { %p1031_p6 = por %p1030_p5, %p1029_p4 }
   0xc   :  { %p1032_p7 = pnand %p1031_p6, %p1025_p3 }
   0xe   :  { %1035 = shalt.err (!%p1032_p7)
}
   0xf   :  { %s1039_s22 = smov 64   ;;  %s1040_s23 = smov 4  }
  0x10   :  { %22 = dma.hbm_to_vmem [thread:$0]  %s1113_s1, 8192, %s17_s13, [#allocation4], %s1039_s22, %s1039_s22, %s1040_s23  }
  0x11   :  { %1036 = dma.done.wait [#allocation4], 8192  }
  0x12   :  { %1037 = vsyncadd [#allocation4], 4294959104  ;;  %v950_v0 = vld [vmem:[#allocation3 + $0x40] sm:$0xff]   ;;  %v954_v4 = vld [vmem:[#allocation3 + $0x48] sm:$0xff]   ;;  %vm40_vm0 = vcmask 80896  }
  0x13   :  { %v951_v1 = vld [vmem:[#allocation3 + $0xc0] sm:$0xff]   ;;  %859 = vmatprep.subr.bf16.mxu0 %v950_v0  ;;  %v955_v5 = vld [vmem:[#allocation3 + $0xc8] sm:$0xff]   ;;  %v958_v8 = vld [vmem:[#allocation3 + $0x50] sm:$0xff]  }
  0x14   :  { %v952_v2 = vld [vmem:[#allocation3] sm:$0xff]   ;;  %881 = vmatprep.subr.bf16.mxu1 %v951_v1  ;;  %v956_v6 = vld [vmem:[#allocation3 + $0x8] sm:$0xff]   ;;  %v959_v9 = vld [vmem:[#allocation3 + $0xd0] sm:$0xff]  }
  0x15   :  { %v953_v3 = vld [vmem:[#allocation3 + $0x80] sm:$0xff]   ;;  %860 = vmatpush3.bf16.msra.mxu0 %v952_v2  ;;  %v957_v7 = vld [vmem:[#allocation3 + $0x88] sm:$0xff]   ;;  %v960_v10 = vld [vmem:[#allocation3 + $0x10] sm:$0xff]  }
  0x16   :  { %882 = vmatpush3.bf16.msra.mxu1 %v953_v3  ;;  %861 = vmatprep.subr.bf16.mxu0 %v954_v4  ;;  %v961_v11 = vld [vmem:[#allocation3 + $0x90] sm:$0xff]   ;;  %v962_v12 = vld [vmem:[#allocation3 + $0x58] sm:$0xff]   ;;  %v966_v16 = vld [vmem:[#allocation3 + $0x60] sm:$0xff]  }
  0x17   :  { %883 = vmatprep.subr.bf16.mxu1 %v955_v5  ;;  %v963_v13 = vld [vmem:[#allocation3 + $0xd8] sm:$0xff]   ;;  %v967_v17 = vld [vmem:[#allocation3 + $0xe0] sm:$0xff]   ;;  %v970_v20 = vld [vmem:[#allocation3 + $0x68] sm:$0xff]  }
  0x18   :  { %v964_v14 = vld [vmem:[#allocation3 + $0x18] sm:$0xff]   ;;  %v968_v18 = vld [vmem:[#allocation3 + $0x20] sm:$0xff]   ;;  %v971_v21 = vld [vmem:[#allocation3 + $0xe8] sm:$0xff]  }
  0x19   :  { %862 = vmatpush3.bf16.msra.mxu0 %v956_v6  ;;  %v965_v15 = vld [vmem:[#allocation3 + $0x98] sm:$0xff]   ;;  %v969_v19 = vld [vmem:[#allocation3 + $0xa0] sm:$0xff]   ;;  %v972_v22 = vld [vmem:[#allocation3 + $0x28] sm:$0xff]  }
  0x1a   :  { %884 = vmatpush3.bf16.msra.mxu1 %v957_v7  ;;  %863 = vmatprep.subr.bf16.mxu0 %v958_v8  ;;  %v973_v23 = vld [vmem:[#allocation3 + $0xa8] sm:$0xff]   ;;  %v974_v24 = vld [vmem:[#allocation3 + $0x70] sm:$0xff]   ;;  %v978_v28 = vld [vmem:[#allocation3 + $0x78] sm:$0xff]  }
  0x1b   :  { %885 = vmatprep.subr.bf16.mxu1 %v959_v9  ;;  %v975_v25 = vld [vmem:[#allocation3 + $0xf0] sm:$0xff]   ;;  %v979_v29 = vld [vmem:[#allocation3 + $0xf8] sm:$0xff]   ;;  %v982_v40 = vld [vmem:[#allocation3 + $0x140] sm:$0xff]  }
  0x1c   :  { %v976_v26 = vld [vmem:[#allocation3 + $0x30] sm:$0xff]   ;;  %v980_v30 = vld [vmem:[#allocation3 + $0x38] sm:$0xff]   ;;  %v983_v41 = vld [vmem:[#allocation3 + $0x1c0] sm:$0xff]  }
  0x1d   :  { %864 = vmatpush3.bf16.msra.mxu0 %v960_v10  ;;  %v977_v27 = vld [vmem:[#allocation3 + $0xb0] sm:$0xff]   ;;  %v981_v31 = vld [vmem:[#allocation3 + $0xb8] sm:$0xff]   ;;  %v984_v42 = vld [vmem:[#allocation3 + $0x100] sm:$0xff]  }
  0x1e   :  { %886 = vmatpush3.bf16.msra.mxu1 %v961_v11  ;;  %865 = vmatprep.subr.bf16.mxu0 %v962_v12  ;;  %v45_v32 = vld [vmem:[%s1112_s0] sm:$0xff]  ;;  %v46_v34 = vld [vmem:[%s1112_s0 + $0x8] sm:$0xff]  ;;  %v985_v43 = vld [vmem:[#allocation3 + $0x180] sm:$0xff]  }
  0x1f   :  { %887 = vmatprep.subr.bf16.mxu1 %v963_v13  ;;  %v49_v33 = vld [vmem:[%s1112_s0 + $0x20] sm:$0xff]  ;;  %v50_v37 = vld [vmem:[%s1112_s0 + $0x28] sm:$0xff]  ;;  %v986_v44 = vld [vmem:[#allocation3 + $0x148] sm:$0xff]  }
  0x20   :  { %v787_v35 = vcombine.low %v45_v32, %v49_v33  ;;  %v788_v36 = vcombine.high %v45_v32, %v49_v33  ;;  %v789_v38 = vcombine.low %v46_v34, %v50_v37  ;;  %v790_v39 = vcombine.high %v46_v34, %v50_v37  ;;  %v987_v45 = vld [vmem:[#allocation3 + $0x1c8] sm:$0xff]   ;;  %v990_v48 = vld [vmem:[#allocation3 + $0x150] sm:$0xff]   ;;  %v994_v52 = vld [vmem:[#allocation3 + $0x158] sm:$0xff]  }
  0x21   :  { %866 = vmatpush3.bf16.msra.mxu0 %v964_v14  ;;  %v988_v46 = vld [vmem:[#allocation3 + $0x108] sm:$0xff]   ;;  %v991_v49 = vld [vmem:[#allocation3 + $0x1d0] sm:$0xff]   ;;  %v995_v53 = vld [vmem:[#allocation3 + $0x1d8] sm:$0xff]  }
  0x22   :  { %888 = vmatpush3.bf16.msra.mxu1 %v965_v15  ;;  %867 = vmatprep.subr.bf16.mxu0 %v966_v16  ;;  %v989_v47 = vld [vmem:[#allocation3 + $0x188] sm:$0xff]   ;;  %v992_v50 = vld [vmem:[#allocation3 + $0x110] sm:$0xff]   ;;  %v996_v54 = vld [vmem:[#allocation3 + $0x118] sm:$0xff]  }
  0x23   :  { %889 = vmatprep.subr.bf16.mxu1 %v967_v17  ;;  %637 = vmatprep.mubr.bf16.mxu0 %v788_v36  ;;  %v993_v51 = vld [vmem:[#allocation3 + $0x190] sm:$0xff]   ;;  %v997_v55 = vld [vmem:[#allocation3 + $0x198] sm:$0xff]   ;;  %v998_v56 = vld [vmem:[#allocation3 + $0x160] sm:$0xff]  }
  0x24   :  { %678 = vmatprep.mubr.bf16.mxu1 %v790_v39  ;;  %v999_v57 = vld [vmem:[#allocation3 + $0x1e0] sm:$0xff]   ;;  %v1002_v60 = vld [vmem:[#allocation3 + $0x168] sm:$0xff]   ;;  %v1006_v0 = vld [vmem:[#allocation3 + $0x170] sm:$0xff]  }
  0x25   :  { %868 = vmatpush3.bf16.msra.mxu0 %v968_v18  ;;  %v1000_v58 = vld [vmem:[#allocation3 + $0x120] sm:$0xff]   ;;  %v1003_v61 = vld [vmem:[#allocation3 + $0x1e8] sm:$0xff]   ;;  %v1007_v1 = vld [vmem:[#allocation3 + $0x1f0] sm:$0xff]  }
  0x26   :  { %890 = vmatpush3.bf16.msra.mxu1 %v969_v19  ;;  %869 = vmatprep.subr.bf16.mxu0 %v970_v20  ;;  %v1001_v59 = vld [vmem:[#allocation3 + $0x1a0] sm:$0xff]   ;;  %v1004_v62 = vld [vmem:[#allocation3 + $0x128] sm:$0xff]   ;;  %v1008_v2 = vld [vmem:[#allocation3 + $0x130] sm:$0xff]  }
  0x27   :  { %891 = vmatprep.subr.bf16.mxu1 %v971_v21  ;;  %v1005_v63 = vld [vmem:[#allocation3 + $0x1a8] sm:$0xff]   ;;  %v1009_v3 = vld [vmem:[#allocation3 + $0x1b0] sm:$0xff]   ;;  %v1010_v4 = vld [vmem:[#allocation3 + $0x178] sm:$0xff]  }
  0x28   :  { %v1011_v5 = vld [vmem:[#allocation3 + $0x1f8] sm:$0xff]   ;;  %v47_v8 = vld [vmem:[%s1112_s0 + $0x10] sm:$0xff]  ;;  %v48_v12 = vld [vmem:[%s1112_s0 + $0x18] sm:$0xff] }
  0x29   :  { %870 = vmatpush3.bf16.msra.mxu0 %v972_v22  ;;  %v1012_v6 = vld [vmem:[#allocation3 + $0x138] sm:$0xff]   ;;  %v51_v9 = vld [vmem:[%s1112_s0 + $0x30] sm:$0xff]  ;;  %v52_v13 = vld [vmem:[%s1112_s0 + $0x38] sm:$0xff] }
  0x2a   :  { %892 = vmatpush3.bf16.msra.mxu1 %v973_v23  ;;  %871 = vmatprep.subr.bf16.mxu0 %v974_v24  ;;  %v1013_v7 = vld [vmem:[#allocation3 + $0x1b8] sm:$0xff]   ;;  %v791_v10 = vcombine.low %v47_v8, %v51_v9  ;;  %v792_v11 = vcombine.high %v47_v8, %v51_v9  ;;  %v793_v14 = vcombine.low %v48_v12, %v52_v13  ;;  %v786_v16 = vld [vmem:[%s1114_s2] ss:$0 sm:$0xff] }
  0x2b   :  { %893 = vmatprep.subr.bf16.mxu1 %v975_v25  ;;  %v794_v15 = vcombine.high %v48_v12, %v52_v13  ;;  %41 = vst.msk [vmem:[#allocation2] sm:$0xff] %vm40_vm0, %v786_v16  ;;  %42 = vst.msk [vmem:[#allocation2 + $0x8] sm:$0xff] %vm40_vm0, %v786_v16 }
  0x2d   :  { %872 = vmatpush3.bf16.msra.mxu0 %v976_v26 }
  0x2e   :  { %894 = vmatpush3.bf16.msra.mxu1 %v977_v27  ;;  %873 = vmatprep.subr.bf16.mxu0 %v978_v28 }
  0x2f   :  { %895 = vmatprep.subr.bf16.mxu1 %v979_v29 }
  0x31   :  { %874 = vmatpush3.bf16.msra.mxu0 %v980_v30 }
  0x32   :  { %896 = vmatpush3.bf16.msra.mxu1 %v981_v31  ;;  %903 = vmatprep.subr.bf16.mxu0 %v982_v40 }
  0x33   :  { %925 = vmatprep.subr.bf16.mxu1 %v983_v41 }
  0x34   :  { %638 = vmatmul.mubr.bf16.vlgmr.msra.gmra.mrb[0].mxu0 %v787_v35 }
  0x35   :  { %679 = vmatmul.mubr.bf16.vlgmr.msra.gmra.mrb[0].mxu1 %v789_v38  ;;  %904 = vmatpush3.bf16.msra.mxu0 %v984_v42 }
  0x36   :  { %926 = vmatpush3.bf16.msra.mxu1 %v985_v43  ;;  %905 = vmatprep.subr.bf16.mxu0 %v986_v44  ;;  %v43_v43 = vld [vmem:[#allocation2] sm:$0xff] }
  0x37   :  { %927 = vmatprep.subr.bf16.mxu1 %v987_v45  ;;  %719 = vmatprep.mubr.bf16.mxu0 %v792_v11 }
  0x38   :  { %760 = vmatprep.mubr.bf16.mxu1 %v794_v15 }
  0x39   :  { %906 = vmatpush3.bf16.msra.mxu0 %v988_v46 }
  0x3a   :  { %928 = vmatpush3.bf16.msra.mxu1 %v989_v47  ;;  %907 = vmatprep.subr.bf16.mxu0 %v990_v48  ;;  %v44_v47 = vld [vmem:[#allocation2 + $0x8] sm:$0xff] }
  0x3b   :  { %929 = vmatprep.subr.bf16.mxu1 %v991_v49 }
  0x3d   :  { %908 = vmatpush3.bf16.msra.mxu0 %v992_v50 }
  0x3e   :  { %930 = vmatpush3.bf16.msra.mxu1 %v993_v51  ;;  %909 = vmatprep.subr.bf16.mxu0 %v994_v52 }
  0x3f   :  { %931 = vmatprep.subr.bf16.mxu1 %v995_v53 }
  0x41   :  { %910 = vmatpush3.bf16.msra.mxu0 %v996_v54 }
  0x42   :  { %932 = vmatpush3.bf16.msra.mxu1 %v997_v55  ;;  %911 = vmatprep.subr.bf16.mxu0 %v998_v56 }
  0x43   :  { %933 = vmatprep.subr.bf16.mxu1 %v999_v57 }
  0x45   :  { %912 = vmatpush3.bf16.msra.mxu0 %v1000_v58 }
  0x46   :  { %934 = vmatpush3.bf16.msra.mxu1 %v1001_v59  ;;  %913 = vmatprep.subr.bf16.mxu0 %v1002_v60 }
  0x47   :  { %935 = vmatprep.subr.bf16.mxu1 %v1003_v61 }
  0x49   :  { %914 = vmatpush3.bf16.msra.mxu0 %v1004_v62 }
  0x4a   :  { %936 = vmatpush3.bf16.msra.mxu1 %v1005_v63  ;;  %915 = vmatprep.subr.bf16.mxu0 %v1006_v0 }
  0x4b   :  { %937 = vmatprep.subr.bf16.mxu1 %v1007_v1 }
  0x4d   :  { %916 = vmatpush3.bf16.msra.mxu0 %v1008_v2 }
  0x4e   :  { %938 = vmatpush3.bf16.msra.mxu1 %v1009_v3  ;;  %917 = vmatprep.subr.bf16.mxu0 %v1010_v4 }
  0x4f   :  { %939 = vmatprep.subr.bf16.mxu1 %v1011_v5 }
  0x51   :  { %918 = vmatpush3.bf16.msra.mxu0 %v1012_v6 }
  0x52   :  { %940 = vmatpush3.bf16.msra.mxu1 %v1013_v7 }
  0x54   :  { %720 = vmatmul.mubr.bf16.vlgmr.msra.gmra.mrb[4].mxu0 %v791_v10 }
  0x55   :  { %761 = vmatmul.mubr.bf16.vlgmr.msra.gmra.mrb[4].mxu1 %v793_v14 }
 0x107   :  { %v875_v17 = vpop.f32.mrb[0].mxu0 }
 0x108   :  { %v897_v18 = vpop.f32.mrb[0].mxu1  ;;  %v876_v19 = vpop.f32.mrb[1].mxu0 }
 0x109   :  { %v877_v20 = vadd.f32 %v876_v19, %v875_v17  ;;  %v898_v21 = vpop.f32.mrb[1].mxu1  ;;  %v878_v22 = vpop.f32.mrb[2].mxu0 }
 0x10a   :  { %v899_v23 = vadd.f32 %v898_v21, %v897_v18  ;;  %v900_v24 = vpop.f32.mrb[2].mxu1  ;;  %v879_v25 = vpop.f32.mrb[3].mxu0 }
 0x10b   :  { %v880_v26 = vadd.f32 %v879_v25, %v878_v22  ;;  %v901_v27 = vpop.f32.mrb[3].mxu1 }
 0x10c   :  { %v681_v28 = vadd.f32 %v899_v23, %v877_v20  ;;  %v902_v29 = vadd.f32 %v901_v27, %v900_v24 }
 0x10e   :  { %v684_v30 = vadd.f32 %v902_v29, %v880_v26 }
 0x127   :  { %v919_v31 = vpop.f32.mrb[4].mxu0 }
 0x128   :  { %v941_v32 = vpop.f32.mrb[4].mxu1  ;;  %v920_v33 = vpop.f32.mrb[5].mxu0 }
 0x129   :  { %v921_v34 = vadd.f32 %v920_v33, %v919_v31  ;;  %v942_v35 = vpop.f32.mrb[5].mxu1  ;;  %v922_v36 = vpop.f32.mrb[6].mxu0 }
 0x12a   :  { %v943_v37 = vadd.f32 %v942_v35, %v941_v32  ;;  %v944_v38 = vpop.f32.mrb[6].mxu1  ;;  %v923_v39 = vpop.f32.mrb[7].mxu0 }
 0x12b   :  { %v722_v40 = vadd.f32 %v921_v34, %v681_v28  ;;  %v924_v41 = vadd.f32 %v923_v39, %v922_v36  ;;  %v945_v42 = vpop.f32.mrb[7].mxu1 }
 0x12c   :  { %v946_v44 = vadd.f32 %v945_v42, %v944_v38 }
 0x12d   :  { %v763_v45 = vadd.f32 %v943_v37, %v722_v40  ;;  %v725_v46 = vadd.f32 %v924_v41, %v684_v30 }
 0x12f   :  { %v769_v48 = vadd.f32 %v763_v45, %v43_v43  ;;  %v766_v49 = vadd.f32 %v946_v44, %v725_v46 }
 0x131   :  { %772 = vst.msk [vmem:[#allocation2] sm:$0xff] %vm40_vm0, %v769_v48  ;;  %v770_v50 = vadd.f32 %v766_v49, %v44_v47 }
 0x133   :  { %773 = vst.msk [vmem:[#allocation2 + $0x8] sm:$0xff] %vm40_vm0, %v770_v50 }
 0x138   :  { %v777_v51 = vld [vmem:[#allocation2] sm:$0xff] }
 0x139   :  { %779 = vst.msk [vmem:[%s1115_s3] sm:$0xff] %vm40_vm0, %v777_v51 }
 0x13a   :  { %v778_v52 = vld [vmem:[#allocation2 + $0x8] sm:$0xff] }
 0x13b   :  { %780 = vst.msk [vmem:[%s1115_s3 + $0x8] sm:$0xff] %vm40_vm0, %v778_v52 }
 0x13c   :  { %785 = vsyncpa [#allocation4], 1 }

</bundles_post_ra>
